<compile_context>
chip_gen: v7x
topology: tpu7x:2x2x1
jax: 0.10.0
libtpu: 0.0.40
codegen_flags: <defaults>
</compile_context>

<pallas_src>
import functools

import jax
import jax.numpy as jnp
from jax.experimental import pallas as pl
from jax.experimental.pallas import tpu as pltpu


def _round_up(n, m):
    return ((n + m - 1) // m) * m


def lstm_cell_kernel(x_ref, w_ref, b_ref, c_ref, h_out_ref, c_out_ref):
    """x:(Bp,In); w:(4,In,Hp) gate-major (i,f,g,o); b:(4,1,Hp) f32; c:(Bp,Hp) f32."""
    x = x_ref[...]

    def gate(idx):
        # One MXU matmul per gate onto a full lane-aligned (Bp, Hp) tile;
        # f32 accumulation regardless of operand dtype (bf16 or f32).
        return jnp.dot(x, w_ref[idx],
                       preferred_element_type=jnp.float32) + b_ref[idx]

    i = jax.nn.sigmoid(gate(0))      # EUP
    f = jax.nn.sigmoid(gate(1))
    g = jnp.tanh(gate(2))
    o = jax.nn.sigmoid(gate(3))

    c_new = f * c_ref[...] + i * g           # pure VPU, lane-aligned
    h_out_ref[...] = o * jnp.tanh(c_new)     # lane-dense store (Hp % 128 == 0)
    c_out_ref[...] = c_new


@jax.jit
def lstm_cell(x, h, c, w_gm, b_gm):
    """Fused LSTMCell forward.

    x: (B, In); h, c: (B, H); w_gm: (4, In, Hp) gate-major, Hp = H padded to a
    multiple of 128; b_gm: (4, 1, Hp) float32.
    Returns (h_new, c_new), each (B, H) float32.

    Note: like the reference module, the gates depend on x only; the incoming
    h is ignored and simply replaced.
    """
    del h  # unused by the reference forward (gates depend on x only)
    B, H = c.shape
    Hp = w_gm.shape[-1]
    Bp = _round_up(B, 8)

    # Pad batch to a sublane multiple; cast x to the matmul dtype (bf16 path
    # halves HBM/VMEM weight traffic and doubles MXU throughput on v6e/v7x).
    x_p = jnp.pad(x, ((0, Bp - B), (0, 0))).astype(w_gm.dtype)
    c_p = jnp.pad(c, ((0, Bp - B), (0, Hp - H))).astype(jnp.float32)

    vmem = functools.partial(pl.BlockSpec, memory_space=pltpu.MemorySpace.VMEM)
    h_p, c_out_p = pl.pallas_call(
        lstm_cell_kernel,
        out_shape=(
            jax.ShapeDtypeStruct((Bp, Hp), jnp.float32),
            jax.ShapeDtypeStruct((Bp, Hp), jnp.float32),
        ),
        in_specs=[vmem(), vmem(), vmem(), vmem()],
        out_specs=(vmem(), vmem()),
    )(x_p, w_gm, b_gm, c_p)
    return h_p[:B, :H], c_out_p[:B, :H]


def pack_params(params, matmul_dtype=jnp.bfloat16):
    """Stack per-gate (W:(H,In), b:(H,)) into gate-major, lane-padded arrays."""
    w_gm = jnp.stack([w.T for (w, _) in params], axis=0)            # (4, In, H)
    b_gm = jnp.stack([b for (_, b) in params], axis=0)[:, None, :]  # (4, 1, H)
    H = w_gm.shape[-1]
    Hp = _round_up(H, 128)
    w_gm = jnp.pad(w_gm, ((0, 0), (0, 0), (0, Hp - H))).astype(matmul_dtype)
    b_gm = jnp.pad(b_gm, ((0, 0), (0, 0), (0, Hp - H))).astype(jnp.float32)
    return w_gm, b_gm


def init_linear_params(key, in_features, out_features):
    """Deterministic init mimicking torch.nn.Linear (uniform +/- 1/sqrt(in))."""
    kw, kb = jax.random.split(key)
    bound = 1.0 / jnp.sqrt(jnp.float32(in_features))
    w = jax.random.uniform(kw, (out_features, in_features), jnp.float32,
                           minval=-bound, maxval=bound)
    b = jax.random.uniform(kb, (out_features,), jnp.float32,
                           minval=-bound, maxval=bound)
    return w, b


def reference_forward(x, h, c, params):
    """Pure-JAX f32 reference matching the PyTorch module exactly."""
    del h
    (wi, bi), (wf, bf), (wg, bg), (wo, bo) = params
    i = jax.nn.sigmoid(x @ wi.T + bi)
    f = jax.nn.sigmoid(x @ wf.T + bf)
    g = jnp.tanh(x @ wg.T + bg)
    o = jax.nn.sigmoid(x @ wo.T + bo)
    c_new = f * c + i * g
    h_new = o * jnp.tanh(c_new)
    return h_new, c_new


if __name__ == "__main__":
    key = jax.random.PRNGKey(0)
    B, In, H = 8, 16, 32

    k_i, k_f, k_g, k_o, k_x, k_h, k_c = jax.random.split(key, 7)
    params = (
        init_linear_params(k_i, In, H),
        init_linear_params(k_f, In, H),
        init_linear_params(k_g, In, H),
        init_linear_params(k_o, In, H),
    )
    x = jax.random.normal(k_x, (B, In), jnp.float32)
    h = jax.random.normal(k_h, (B, H), jnp.float32)
    c = jax.random.normal(k_c, (B, H), jnp.float32)

    h_ref, c_ref = reference_forward(x, h, c, params)

    # Strict check: f32 MXU operands (same numerics as the module).
    w32, b32 = pack_params(params, matmul_dtype=jnp.float32)
    h32, c32 = lstm_cell(x, h, c, w32, b32)
    jax.block_until_ready((h32, c32))
    assert jnp.allclose(h32, h_ref, atol=1e-5, rtol=1e-5), "h mismatch (f32)"
    assert jnp.allclose(c32, c_ref, atol=1e-5, rtol=1e-5), "c mismatch (f32)"

    # Perf path: bf16 MXU operands, f32 accumulation + f32 gating.
    wbf, bbf = pack_params(params, matmul_dtype=jnp.bfloat16)
    hbf, cbf = lstm_cell(x, h, c, wbf, bbf)
    jax.block_until_ready((hbf, cbf))
    assert jnp.allclose(hbf, h_ref, atol=3e-2, rtol=3e-2), "h mismatch (bf16)"
    assert jnp.allclose(cbf, c_ref, atol=3e-2, rtol=3e-2), "c mismatch (bf16)"

    print("KERNEL_OK")
</pallas_src>

<mosaic_0001>
module attributes {stable_mosaic.version = 11 : i64} {
  func.func @lstm_cell_kernel(%arg0: memref<8x16xf32, #tpu.memory_space<vmem>>, %arg1: memref<4x16x128xf32, #tpu.memory_space<vmem>>, %arg2: memref<4x1x128xf32, #tpu.memory_space<vmem>>, %arg3: memref<8x128xf32, #tpu.memory_space<vmem>>, %arg4: memref<8x128xf32, #tpu.memory_space<vmem>>, %arg5: memref<8x128xf32, #tpu.memory_space<vmem>>) attributes {dimension_semantics = [], scalar_prefetch = 0 : i64, scratch_operands = 0 : i64, tpu.core_type = #tpu.core_type<tc>} {
    %c0 = arith.constant 0 : index
    %c0_0 = arith.constant 0 : index
    %0 = vector.load %arg0[%c0, %c0_0] : memref<8x16xf32, #tpu.memory_space<vmem>>, vector<8x16xf32>
    %c0_1 = arith.constant 0 : index
    %c0_2 = arith.constant 0 : index
    %c0_3 = arith.constant 0 : index
    %1 = vector.load %arg1[%c0_1, %c0_2, %c0_3] : memref<4x16x128xf32, #tpu.memory_space<vmem>>, vector<1x16x128xf32>
    %2 = vector.shape_cast %1 : vector<1x16x128xf32> to vector<16x128xf32>
    %cst = arith.constant dense<0.000000e+00> : vector<8x128xf32>
    %3 = tpu.matmul %0, %2, %cst {dimension_numbers = #tpu.dot_dimension_numbers<[1], [0], [0], [1], [0, 0, 1, 1], [], []>} : vector<8x16xf32>, vector<16x128xf32>, vector<8x128xf32> -> vector<8x128xf32>
    %c0_4 = arith.constant 0 : index
    %c0_5 = arith.constant 0 : index
    %c0_6 = arith.constant 0 : index
    %4 = vector.load %arg2[%c0_4, %c0_5, %c0_6] : memref<4x1x128xf32, #tpu.memory_space<vmem>>, vector<1x1x128xf32>
    %5 = vector.shape_cast %4 : vector<1x1x128xf32> to vector<1x128xf32>
    %6 = vector.broadcast %5 : vector<1x128xf32> to vector<8x128xf32>
    %7 = arith.addf %3, %6 : vector<8x128xf32>
    %8 = arith.negf %7 : vector<8x128xf32>
    %9 = math.exp %8 : vector<8x128xf32>
    %cst_7 = arith.constant 1.000000e+00 : f32
    %10 = vector.broadcast %cst_7 : f32 to vector<8x128xf32>
    %11 = arith.addf %10, %9 : vector<8x128xf32>
    %12 = arith.divf %10, %11 : vector<8x128xf32>
    %c1 = arith.constant 1 : index
    %c0_8 = arith.constant 0 : index
    %c0_9 = arith.constant 0 : index
    %13 = vector.load %arg1[%c1, %c0_8, %c0_9] : memref<4x16x128xf32, #tpu.memory_space<vmem>>, vector<1x16x128xf32>
    %14 = vector.shape_cast %13 : vector<1x16x128xf32> to vector<16x128xf32>
    %cst_10 = arith.constant dense<0.000000e+00> : vector<8x128xf32>
    %15 = tpu.matmul %0, %14, %cst_10 {dimension_numbers = #tpu.dot_dimension_numbers<[1], [0], [0], [1], [0, 0, 1, 1], [], []>} : vector<8x16xf32>, vector<16x128xf32>, vector<8x128xf32> -> vector<8x128xf32>
    %c1_11 = arith.constant 1 : index
    %c0_12 = arith.constant 0 : index
    %c0_13 = arith.constant 0 : index
    %16 = vector.load %arg2[%c1_11, %c0_12, %c0_13] : memref<4x1x128xf32, #tpu.memory_space<vmem>>, vector<1x1x128xf32>
    %17 = vector.shape_cast %16 : vector<1x1x128xf32> to vector<1x128xf32>
    %18 = vector.broadcast %17 : vector<1x128xf32> to vector<8x128xf32>
    %19 = arith.addf %15, %18 : vector<8x128xf32>
    %20 = arith.negf %19 : vector<8x128xf32>
    %21 = math.exp %20 : vector<8x128xf32>
    %cst_14 = arith.constant 1.000000e+00 : f32
    %22 = vector.broadcast %cst_14 : f32 to vector<8x128xf32>
    %23 = arith.addf %22, %21 : vector<8x128xf32>
    %24 = arith.divf %22, %23 : vector<8x128xf32>
    %c2 = arith.constant 2 : index
    %c0_15 = arith.constant 0 : index
    %c0_16 = arith.constant 0 : index
    %25 = vector.load %arg1[%c2, %c0_15, %c0_16] : memref<4x16x128xf32, #tpu.memory_space<vmem>>, vector<1x16x128xf32>
    %26 = vector.shape_cast %25 : vector<1x16x128xf32> to vector<16x128xf32>
    %cst_17 = arith.constant dense<0.000000e+00> : vector<8x128xf32>
    %27 = tpu.matmul %0, %26, %cst_17 {dimension_numbers = #tpu.dot_dimension_numbers<[1], [0], [0], [1], [0, 0, 1, 1], [], []>} : vector<8x16xf32>, vector<16x128xf32>, vector<8x128xf32> -> vector<8x128xf32>
    %c2_18 = arith.constant 2 : index
    %c0_19 = arith.constant 0 : index
    %c0_20 = arith.constant 0 : index
    %28 = vector.load %arg2[%c2_18, %c0_19, %c0_20] : memref<4x1x128xf32, #tpu.memory_space<vmem>>, vector<1x1x128xf32>
    %29 = vector.shape_cast %28 : vector<1x1x128xf32> to vector<1x128xf32>
    %30 = vector.broadcast %29 : vector<1x128xf32> to vector<8x128xf32>
    %31 = arith.addf %27, %30 : vector<8x128xf32>
    %32 = math.tanh %31 : vector<8x128xf32>
    %c3 = arith.constant 3 : index
    %c0_21 = arith.constant 0 : index
    %c0_22 = arith.constant 0 : index
    %33 = vector.load %arg1[%c3, %c0_21, %c0_22] : memref<4x16x128xf32, #tpu.memory_space<vmem>>, vector<1x16x128xf32>
    %34 = vector.shape_cast %33 : vector<1x16x128xf32> to vector<16x128xf32>
    %cst_23 = arith.constant dense<0.000000e+00> : vector<8x128xf32>
    %35 = tpu.matmul %0, %34, %cst_23 {dimension_numbers = #tpu.dot_dimension_numbers<[1], [0], [0], [1], [0, 0, 1, 1], [], []>} : vector<8x16xf32>, vector<16x128xf32>, vector<8x128xf32> -> vector<8x128xf32>
    %c3_24 = arith.constant 3 : index
    %c0_25 = arith.constant 0 : index
    %c0_26 = arith.constant 0 : index
    %36 = vector.load %arg2[%c3_24, %c0_25, %c0_26] : memref<4x1x128xf32, #tpu.memory_space<vmem>>, vector<1x1x128xf32>
    %37 = vector.shape_cast %36 : vector<1x1x128xf32> to vector<1x128xf32>
    %38 = vector.broadcast %37 : vector<1x128xf32> to vector<8x128xf32>
    %39 = arith.addf %35, %38 : vector<8x128xf32>
    %40 = arith.negf %39 : vector<8x128xf32>
    %41 = math.exp %40 : vector<8x128xf32>
    %cst_27 = arith.constant 1.000000e+00 : f32
    %42 = vector.broadcast %cst_27 : f32 to vector<8x128xf32>
    %43 = arith.addf %42, %41 : vector<8x128xf32>
    %44 = arith.divf %42, %43 : vector<8x128xf32>
    %c0_28 = arith.constant 0 : index
    %c0_29 = arith.constant 0 : index
    %45 = vector.load %arg3[%c0_28, %c0_29] : memref<8x128xf32, #tpu.memory_space<vmem>>, vector<8x128xf32>
    %46 = arith.mulf %24, %45 : vector<8x128xf32>
    %47 = arith.mulf %12, %32 : vector<8x128xf32>
    %48 = arith.addf %46, %47 : vector<8x128xf32>
    %49 = math.tanh %48 : vector<8x128xf32>
    %50 = arith.mulf %44, %49 : vector<8x128xf32>
    %c0_30 = arith.constant 0 : index
    %c0_31 = arith.constant 0 : index
    %51 = vector.load %arg4[%c0_30, %c0_31] : memref<8x128xf32, #tpu.memory_space<vmem>>, vector<8x128xf32>
    tpu.vector_store %arg4[%c0_30, %c0_31], %50 {strides = array<i32>} : memref<8x128xf32, #tpu.memory_space<vmem>>, vector<8x128xf32>,
    %c0_32 = arith.constant 0 : index
    %c0_33 = arith.constant 0 : index
    %52 = vector.load %arg5[%c0_32, %c0_33] : memref<8x128xf32, #tpu.memory_space<vmem>>, vector<8x128xf32>
    tpu.vector_store %arg5[%c0_32, %c0_33], %48 {strides = array<i32>} : memref<8x128xf32, #tpu.memory_space<vmem>>, vector<8x128xf32>,
    return
  }
}

</mosaic_0001>

<bundles_post_ra>
// kernel: lstm_cell.1
= control target key start
LH: loop header
LB: loop body
LE: loop exit
PB: predicated region body
PF: predicated region fallthrough
CT: control target
= control target key end

     0   :  { %11 = vsyncpa [#allocation3], 0  ;;  %s676_s0 = inlined_call_operand.vmem [shape: f32[8,16], index: 0, kind: input, shape index: {}]   ;;  %s677_s1 = inlined_call_operand.hbm [shape: f32[4,16,128], index: 1, kind: input, shape index: {}]   ;;  %s678_s2 = inlined_call_operand.vmem [shape: f32[4,1,128], index: 2, kind: input, shape index: {}]   ;;  %s679_s3 = inlined_call_operand.vmem [shape: f32[8,128], index: 3, kind: input, shape index: {}]   ;;  %s680_s4 = inlined_call_operand.hbm [shape: f32[8,128], index: 4, kind: output, shape index: {0}]   ;;  %s681_s5 = inlined_call_operand.hbm [shape: f32[8,128], index: 5, kind: output, shape index: {1}]  }
   0x1   :  { %12 = vsyncpa [#allocation4], 0 }
   0x2   :  { %13 = vsyncpa [#allocation7], 0  ;;  %s580_s18 = smov [#allocation2]   ;;  %s508_s22 = scalar_lea.hbm %s677_s1, 1024 }
   0x3   :  { %s21_s19 = sshll.u32 %s580_s18, 4  ;;  %p509_p0 = scmp.ne.s32.totalorder %s677_s1, %s508_s22  ;;  %s22_s19 = int_to_ptr.vmem [resolvable:$true] %s21_s19 }
   0x4   :  { %p512_p1 = scmp.lt.u32.totalorder %s508_s22, %s677_s1 }
   0x6   :  { %p514_p2 = pnand %p512_p1, %p509_p0 }
   0x8   :  { %517 = shalt.err (!%p514_p2)
}
   0x9   :  { %s518_s27 = scalar_lea.vmem %s22_s19, 1024  ;;  %p523_p4 = scmp.lt.s32.totalorder %s22_s19, %s22_s19 }
   0xa   :  { %p519_p3 = scmp.ne.s32.totalorder %s22_s19, %s518_s27  ;;  %p524_p5 = scmp.lt.s32.totalorder %s518_s27, %s518_s27 }
   0xc   :  { %p525_p6 = por %p524_p5, %p523_p4 }
   0xe   :  { %p526_p7 = pnand %p525_p6, %p519_p3 }
  0x10   :  { %529 = shalt.err (!%p526_p7)
}
  0x11   :  { %s581_s28 = smov 128   ;;  %s582_s29 = smov 8  }
  0x12   :  { %27 = dma.hbm_to_vmem [thread:$0]  %s677_s1, 1024, %s22_s19, [#allocation3], %s581_s28, %s581_s28, %s582_s29  }
  0x13   :  { %574 = dma.done.wait [#allocation3], 1024  }
  0x14   :  { %575 = vsyncadd [#allocation3], 4294966272  ;;  %v583_v0 = vmov 0.0|0.0   ;;  %vm584_vm0 = vmmov 0   ;;  %v585_v1 = vmov 0.0   ;;  %v36_v2 = vld [vmem:[#allocation2] sm:$0xff] }
  0x15   :  { %472 = vmatprep.subr.bf16.mxu0 %v583_v0  ;;  %475 = vmatprep.subr.bf16.mxu1 %v583_v0  ;;  %v37_v3 = vld [vmem:[#allocation2 + $0x8] sm:$0xff]  ;;  %v126_v4 = vld [vmem:[#allocation2 + $0x10] sm:$0xff]  ;;  %v127_v6 = vld [vmem:[#allocation2 + $0x18] sm:$0xff]  ;;  %vm45_vm1 = vcmask 130048  }
  0x16   :  { %448 = vmatprep.mubr.msk.f32.mxu0 %vm584_vm0, %v585_v1  ;;  %455 = vmatprep.mubr.msk.f32.mxu1 %vm584_vm0, %v585_v1  ;;  %v473_v5 = vpack.c.bf16 %v37_v3, %v36_v2  ;;  %v213_v7 = vld [vmem:[#allocation2 + $0x20] sm:$0xff]  ;;  %v476_v8 = vpack.c.bf16 %v127_v6, %v126_v4  ;;  %v214_v9 = vld [vmem:[#allocation2 + $0x28] sm:$0xff]  ;;  %v295_v10 = vld [vmem:[#allocation2 + $0x30] sm:$0xff] }
  0x17   :  { %v296_v11 = vld [vmem:[#allocation2 + $0x38] sm:$0xff]  ;;  %v35_v12 = vld [vmem:[%s676_s0] sm:$0xff]  ;;  %v479_v13 = vpack.c.bf16 %v214_v9, %v213_v7 }
  0x18   :  { %474 = vmatpush3.bf16.msra.mxu0 %v473_v5  ;;  %477 = vmatpush3.bf16.msra.mxu1 %v476_v8  ;;  %v482_v14 = vpack.c.bf16 %v296_v11, %v295_v10  ;;  %v418_v15 = vld [vmem:[%s678_s2] ss:$0 sm:$0xff]  ;;  %v422_v16 = vld [vmem:[%s678_s2 + $0x1] ss:$0 sm:$0xff]  ;;  %v429_v26 = vld [vmem:[%s678_s2 + $0x3] ss:$0 sm:$0xff] }
  0x19   :  { %478 = vmatprep.subr.bf16.mxu0 %v583_v0  ;;  %481 = vmatprep.subr.bf16.mxu1 %v583_v0  ;;  %v426_v31 = vld [vmem:[%s678_s2 + $0x2] ss:$0 sm:$0xff]  ;;  %s586_s2 = smov [#allocation6]  }
  0x1a   :  { %v381_v40 = vld [vmem:[%s679_s3] sm:$0xff]  ;;  %s405_s17 = sshll.u32 %s586_s2, 4  ;;  %s406_s17 = int_to_ptr.vmem [resolvable:$true] %s405_s17 }
  0x1b   :  { %449 = vmatmul.mubr.msk.f32.vlgmr.msra.gmra.mrb[0].mxu0 %vm45_vm1, %v35_v12  ;;  %456 = vmatmul.mubr.msk.f32.vlgmr.msra.gmra.mrb[0].mxu1 %vm45_vm1, %v35_v12  ;;  %s530_s18 = scalar_lea.vmem %s406_s17, 128  ;;  %p535_p9 = scmp.lt.s32.totalorder %s406_s17, %s406_s17 }
  0x1c   :  { %480 = vmatpush3.bf16.msra.mxu0 %v479_v13  ;;  %483 = vmatpush3.bf16.msra.mxu1 %v482_v14  ;;  %p531_p8 = scmp.ne.s32.totalorder %s406_s17, %s530_s18  ;;  %p536_p10 = scmp.lt.s32.totalorder %s530_s18, %s530_s18 }
  0x1d   :  { %462 = vmatprep.mubr.msk.f32.mxu0 %vm584_vm0, %v585_v1  ;;  %469 = vmatprep.mubr.msk.f32.mxu1 %vm584_vm0, %v585_v1 }
  0x1e   :  { %p537_p11 = por %p536_p10, %p535_p9 }
  0x1f   :  { %463 = vmatmul.mubr.msk.f32.vlgmr.msra.gmra.mrb[2].mxu0 %vm45_vm1, %v35_v12  ;;  %470 = vmatmul.mubr.msk.f32.vlgmr.msra.gmra.mrb[2].mxu1 %vm45_vm1, %v35_v12 }
  0x20   :  { %p538_p12 = pnand %p537_p11, %p531_p8 }
  0xee   :  { %v115_v17 = vpop.f32.mrb[0].mxu0  ;;  %v202_v19 = vpop.f32.mrb[0].mxu1 }
  0xef   :  { %v116_v18 = vadd.f32 %v418_v15, %v115_v17  ;;  %v450_v20 = vpop.f32.mrb[1].mxu0  ;;  %v203_v21 = vadd.f32 %v422_v16, %v202_v19  ;;  %v457_v22 = vpop.f32.mrb[1].mxu1 }
  0xf1   :  { %v420_v23 = vmul.f32 -1.442695, %v116_v18  ;;  %v424_v24 = vmul.f32 -1.442695, %v203_v21 }
  0xf2   :  { %v289_v25 = vpop.f32.mrb[2].mxu0  ;;  %v371_v27 = vpop.f32.mrb[2].mxu1 }
  0xf3   :  { %492 = vpow2.f32 %v420_v23  ;;  %v464_v28 = vpop.f32.mrb[3].mxu0  ;;  %v471_v29 = vpop.f32.mrb[3].mxu1  ;;  %v372_v30 = vadd.f32 %v429_v26, %v371_v27  ;;  %v290_v33 = vadd.f32 %v426_v31, %v289_v25 }
  0xf4   :  { %494 = vpow2.f32 %v424_v24 }
  0xf5   :  { %v431_v32 = vmul.f32 -1.442695, %v372_v30 }
  0xf7   :  { %496 = vpow2.f32 %v431_v32 }
  0xf8   :  { %498 = vtanh.f32 %v290_v33 }
  0xfd   :  { %v493_v34 = vpop.eup %492 }
  0xfe   :  { %v495_v35 = vpop.eup %494  ;;  %v122_v36 = vadd.f32 1.0, %v493_v34 }
  0xff   :  { %v209_v37 = vadd.f32 1.0, %v495_v35 }
 0x100   :  { %500 = vrcp.f32 %v122_v36 }
 0x101   :  { %502 = vrcp.f32 %v209_v37  ;;  %v497_v38 = vpop.eup %496 }
 0x102   :  { %v499_v39 = vpop.eup %498  ;;  %v378_v42 = vadd.f32 1.0, %v497_v38 }
 0x104   :  { %504 = vrcp.f32 %v378_v42 }
 0x10a   :  { %v501_v41 = vpop.eup %500 }
 0x10b   :  { %v503_v43 = vpop.eup %502  ;;  %v383_v44 = vmul.f32 %v501_v41, %v499_v39 }
 0x10c   :  { %v382_v45 = vmul.f32 %v503_v43, %v381_v40 }
 0x10e   :  { %v384_v46 = vadd.f32 %v383_v44, %v382_v45 }
 0x110   :  { %388 = vst [vmem:[#allocation6] sm:$0xff] %v384_v46  ;;  %506 = vtanh.f32 %v384_v46 }
 0x111   :  { %541 = shalt.err (!%p538_p12)
}
 0x112   :  { %s542_s20 = scalar_lea.hbm %s681_s5, 128 }
 0x113   :  { %p543_p13 = scmp.ne.s32.totalorder %s681_s5, %s542_s20  ;;  %p546_p0 = scmp.lt.u32.totalorder %s542_s20, %s681_s5 }
 0x115   :  { %p548_p1 = pnand %p546_p0, %p543_p13 }
 0x117   :  { %551 = shalt.err (!%p548_p1)
}
 0x118   :  { %408 = dma.vmem_to_hbm [thread:$0]  %s406_s17, 128, %s681_s5, [#allocation7]   ;;  %v505_v47 = vpop.eup %504 }
 0x119   :  { %s587_s27 = smov [#allocation5]  }
 0x11a   :  { %s395_s28 = sshll.u32 %s587_s27, 4  ;;  %v507_v48 = vpop.eup %506  ;;  %s396_s28 = int_to_ptr.vmem [resolvable:$true] %s395_s28 }
 0x11b   :  { %v386_v49 = vmul.f32 %v507_v48, %v505_v47  ;;  %s552_s29 = scalar_lea.vmem %s396_s28, 128  ;;  %p557_p3 = scmp.lt.s32.totalorder %s396_s28, %s396_s28 }
 0x11c   :  { %p553_p2 = scmp.ne.s32.totalorder %s396_s28, %s552_s29  ;;  %p558_p4 = scmp.lt.s32.totalorder %s552_s29, %s552_s29 }
 0x11d   :  { %387 = vst [vmem:[#allocation5] sm:$0xff] %v386_v49 }
 0x11e   :  { %p559_p5 = por %p558_p4, %p557_p3 }
 0x120   :  { %p560_p6 = pnand %p559_p5, %p553_p2 }
 0x122   :  { %563 = shalt.err (!%p560_p6)
}
 0x123   :  { %s564_s1 = scalar_lea.hbm %s680_s4, 128 }
 0x124   :  { %p565_p7 = scmp.ne.s32.totalorder %s680_s4, %s564_s1  ;;  %p568_p8 = scmp.lt.u32.totalorder %s564_s1, %s680_s4 }
 0x126   :  { %p570_p9 = pnand %p568_p8, %p565_p7 }
 0x128   :  { %573 = shalt.err (!%p570_p9)
}
 0x129   :  { %398 = dma.vmem_to_hbm [thread:$0]  %s396_s28, 128, %s680_s4, [#allocation4]  }
 0x12a   :  { %576 = dma.done.wait [#allocation4], 128  }
 0x12b   :  { %577 = vsyncadd [#allocation4], 4294967168 }
 0x12c   :  { %578 = dma.done.wait [#allocation7], 128  }
 0x12d   :  { %579 = vsyncadd [#allocation7], 4294967168 }
 0x12e   :  { %415 = vsyncpa [#allocation3], 1 }
 0x12f   :  { %416 = vsyncpa [#allocation4], 1 }
 0x130   :  { %417 = vsyncpa [#allocation7], 1 }

</bundles_post_ra>
